<compile_context>
chip_gen: v5e
topology: v5e:2x2
jax: 0.10.0
libtpu: 0.0.40
codegen_flags: <defaults>
</compile_context>

<pallas_src>
import jax
import jax.numpy as jnp
from jax import lax
from jax.experimental import pallas as pl
from jax.experimental.pallas import tpu as pltpu


def _make_kernel(tb, H, W):
    Hp, Wp = H + 2, W + 2

    def kernel(pred_ref, targ_ref, out_ref, dpad_ref):
        # d = pred - targ, upcast to f32 in-kernel (inputs stream at native dtype).
        d = pred_ref[...].astype(jnp.float32) - targ_ref[...].astype(jnp.float32)

        # Zero only the 1-pixel border of the padded scratch (conv padding=1);
        # the interior [1:H+1, 1:W+1] is fully overwritten by d below.  This
        # keeps every grid step self-contained (safe under "parallel") while
        # avoiding a full-slab zero fill every step.
        dpad_ref[:, 0:1, :] = jnp.zeros((tb, 1, Wp), jnp.float32)
        dpad_ref[:, Hp - 1:Hp, :] = jnp.zeros((tb, 1, Wp), jnp.float32)
        dpad_ref[:, :, 0:1] = jnp.zeros((tb, Hp, 1), jnp.float32)
        dpad_ref[:, :, Wp - 1:Wp] = jnp.zeros((tb, Hp, 1), jnp.float32)
        dpad_ref[:, 1:H + 1, 1:W + 1] = d

        # Separable Prewitt (F.conv2d cross-correlation semantics) on the
        # difference image:
        #   gx(i,j) = sum_a dpad(i+a, j) - sum_a dpad(i+a, j+2)
        #   gy(i,j) = sum_b dpad(i, j+b) - sum_b dpad(i+2, j+b)
        col = (dpad_ref[:, 0:H, :]
               + dpad_ref[:, 1:H + 1, :]
               + dpad_ref[:, 2:H + 2, :])              # (tb, H, W+2)
        gx = col[:, :, 0:W] - col[:, :, 2:W + 2]       # prewitt_x(pred - targ)

        row = (dpad_ref[:, :, 0:W]
               + dpad_ref[:, :, 1:W + 1]
               + dpad_ref[:, :, 2:W + 2])              # (tb, H+2, W)
        gy = row[:, 0:H, :] - row[:, 2:H + 2, :]       # prewitt_y(pred - targ)

        partial = jnp.sum(gx * gx + gy * gy)
        out_ref[...] = jnp.broadcast_to(partial, out_ref.shape)

    return kernel


def _choose_tiling(B, H, W, in_itemsize):
    """Pick (TB, num_blocks): biggest per-step batch within a conservative VMEM
    budget, while keeping >=2 grid steps so v7x's two TensorCores can both work
    (the grid axis is 'parallel')."""

    def phys(nrows, ncols, itemsize):
        # (sublane, lane)-padded VMEM footprint of one 2-D image slice.
        sub = ((nrows + 7) // 8) * 8
        lane = ((ncols + 127) // 128) * 128
        return sub * lane * itemsize

    # per-image cost: two double-buffered inputs + the f32 padded scratch.
    per_img = 2 * 2 * phys(H, W, in_itemsize) + phys(H + 2, W + 2, 4)
    budget = 6 * 1024 * 1024   # headroom under v5e's 16 MiB default scoped VMEM
    tb_max = max(1, budget // per_img)
    # TODO(synk): for images so large that even TB=1 exceeds VMEM, tile along H
    # with a 2-row halo instead of shipping whole padded images per grid step.

    tb = min(B, tb_max)
    if B >= 2:
        tb = min(tb, (B + 1) // 2)   # ensure at least 2 grid steps
    num_blocks = (B + tb - 1) // tb
    return tb, num_blocks


def prewitt_loss(predicted, target):
    """Pallas implementation of PrewittLoss.forward (returns scalar f32)."""
    assert predicted.shape == target.shape
    N, C, H, W = predicted.shape
    assert C == 1, "Prewitt conv kernels are (1,1,3,3); in-channels must be 1"
    B = N * C

    pred = predicted.reshape(B, H, W)   # native dtype; upcast happens in-kernel
    targ = target.reshape(B, H, W)

    tb, num_blocks = _choose_tiling(B, H, W, pred.dtype.itemsize)
    b_pad = tb * num_blocks
    if b_pad != B:
        # zero batch-padding: pred == targ == 0 there -> contributes 0 to the sum
        pad = ((0, b_pad - B), (0, 0), (0, 0))
        pred = jnp.pad(pred, pad)
        targ = jnp.pad(targ, pad)

    partials = pl.pallas_call(
        _make_kernel(tb, H, W),
        out_shape=jax.ShapeDtypeStruct((num_blocks, 8, 128), jnp.float32),
        grid_spec=pltpu.PrefetchScalarGridSpec(
            num_scalar_prefetch=0,
            grid=(num_blocks,),
            in_specs=[
                pl.BlockSpec((tb, H, W), lambda i: (i, 0, 0)),
                pl.BlockSpec((tb, H, W), lambda i: (i, 0, 0)),
            ],
            out_specs=pl.BlockSpec((1, 8, 128), lambda i: (i, 0, 0)),
            scratch_shapes=[pltpu.VMEM((tb, H + 2, W + 2), jnp.float32)],
        ),
        compiler_params=pltpu.CompilerParams(
            dimension_semantics=("parallel",),   # independent per-block partials
        ),
    )(pred, targ)

    total = jnp.sum(partials[:, 0, 0])          # final reduction in the wrapper
    return total / jnp.float32(N * C * H * W)


def _reference_loss(predicted, target):
    # Pure-JAX reference mirroring the PyTorch module (conv2d, padding=1).
    kx = jnp.array([[1., 0., -1.], [1., 0., -1.], [1., 0., -1.]],
                   jnp.float32).reshape(1, 1, 3, 3)
    ky = jnp.array([[1., 1., 1.], [0., 0., 0.], [-1., -1., -1.]],
                   jnp.float32).reshape(1, 1, 3, 3)

    def conv(x, k):
        return lax.conv_general_dilated(
            x, k, window_strides=(1, 1), padding=[(1, 1), (1, 1)],
            dimension_numbers=("NCHW", "OIHW", "NCHW"))

    pgx, pgy = conv(predicted, kx), conv(predicted, ky)
    tgx, tgy = conv(target, kx), conv(target, ky)
    return jnp.mean((pgx - tgx) ** 2 + (pgy - tgy) ** 2)


if __name__ == "__main__":
    key = jax.random.PRNGKey(0)
    k1, k2 = jax.random.split(key)
    # NCHW, C=1 as required by the (1,1,3,3) Prewitt kernels
    predicted = jax.random.normal(k1, (2, 1, 16, 16), dtype=jnp.float32)
    target = jax.random.normal(k2, (2, 1, 16, 16), dtype=jnp.float32)

    loss = prewitt_loss(predicted, target)
    jax.block_until_ready(loss)

    ref = _reference_loss(predicted, target)
    assert jnp.allclose(loss, ref, rtol=1e-5, atol=1e-5), (loss, ref)

    print("KERNEL_OK")
</pallas_src>

<mosaic_0001>
module attributes {stable_mosaic.version = 11 : i64} {
  func.func @kernel(%arg0: i32, %arg1: memref<1x16x16xf32, #tpu.memory_space<vmem>>, %arg2: memref<1x16x16xf32, #tpu.memory_space<vmem>>, %arg3: memref<1x8x128xf32, #tpu.memory_space<vmem>>, %arg4: memref<1x18x18xf32, #tpu.memory_space<vmem>>) attributes {dimension_semantics = [#tpu.dimension_semantics<parallel>], iteration_bounds = array<i64: 2>, scalar_prefetch = 0 : i64, scratch_operands = 1 : i64, tpu.core_type = #tpu.core_type<tc>, window_params = [{transform_indices = @transform_0, window_bounds = array<i64: 1, 16, 16>}, {transform_indices = @transform_1, window_bounds = array<i64: 1, 16, 16>}, {transform_indices = @transform_2, window_bounds = array<i64: 1, 8, 128>}]} {
    %c0 = arith.constant 0 : index
    %c0_0 = arith.constant 0 : index
    %c0_1 = arith.constant 0 : index
    %0 = vector.load %arg1[%c0, %c0_0, %c0_1] : memref<1x16x16xf32, #tpu.memory_space<vmem>>, vector<1x16x16xf32>
    %c0_2 = arith.constant 0 : index
    %c0_3 = arith.constant 0 : index
    %c0_4 = arith.constant 0 : index
    %1 = vector.load %arg2[%c0_2, %c0_3, %c0_4] : memref<1x16x16xf32, #tpu.memory_space<vmem>>, vector<1x16x16xf32>
    %2 = arith.subf %0, %1 : vector<1x16x16xf32>
    %cst = arith.constant 0.000000e+00 : f32
    %3 = vector.broadcast %cst : f32 to vector<1x1x18xf32>
    %c0_5 = arith.constant 0 : index
    %c0_6 = arith.constant 0 : index
    %c0_7 = arith.constant 0 : index
    %4 = vector.load %arg4[%c0_5, %c0_6, %c0_7] : memref<1x18x18xf32, #tpu.memory_space<vmem>>, vector<1x1x18xf32>
    tpu.vector_store %arg4[%c0_5, %c0_6, %c0_7], %3 {strides = array<i32>} : memref<1x18x18xf32, #tpu.memory_space<vmem>>, vector<1x1x18xf32>,
    %cst_8 = arith.constant 0.000000e+00 : f32
    %5 = vector.broadcast %cst_8 : f32 to vector<1x1x18xf32>
    %c0_9 = arith.constant 0 : index
    %c17 = arith.constant 17 : index
    %c0_10 = arith.constant 0 : index
    %6 = vector.load %arg4[%c0_9, %c17, %c0_10] : memref<1x18x18xf32, #tpu.memory_space<vmem>>, vector<1x1x18xf32>
    tpu.vector_store %arg4[%c0_9, %c17, %c0_10], %5 {strides = array<i32>} : memref<1x18x18xf32, #tpu.memory_space<vmem>>, vector<1x1x18xf32>,
    %cst_11 = arith.constant 0.000000e+00 : f32
    %7 = vector.broadcast %cst_11 : f32 to vector<1x18x1xf32>
    %c0_12 = arith.constant 0 : index
    %c0_13 = arith.constant 0 : index
    %c0_14 = arith.constant 0 : index
    %8 = vector.load %arg4[%c0_12, %c0_13, %c0_14] : memref<1x18x18xf32, #tpu.memory_space<vmem>>, vector<1x18x1xf32>
    tpu.vector_store %arg4[%c0_12, %c0_13, %c0_14], %7 {strides = array<i32>} : memref<1x18x18xf32, #tpu.memory_space<vmem>>, vector<1x18x1xf32>,
    %cst_15 = arith.constant 0.000000e+00 : f32
    %9 = vector.broadcast %cst_15 : f32 to vector<1x18x1xf32>
    %c0_16 = arith.constant 0 : index
    %c0_17 = arith.constant 0 : index
    %c17_18 = arith.constant 17 : index
    %10 = vector.load %arg4[%c0_16, %c0_17, %c17_18] : memref<1x18x18xf32, #tpu.memory_space<vmem>>, vector<1x18x1xf32>
    tpu.vector_store %arg4[%c0_16, %c0_17, %c17_18], %9 {strides = array<i32>} : memref<1x18x18xf32, #tpu.memory_space<vmem>>, vector<1x18x1xf32>,
    %c0_19 = arith.constant 0 : index
    %c1 = arith.constant 1 : index
    %c1_20 = arith.constant 1 : index
    %11 = vector.load %arg4[%c0_19, %c1, %c1_20] : memref<1x18x18xf32, #tpu.memory_space<vmem>>, vector<1x16x16xf32>
    tpu.vector_store %arg4[%c0_19, %c1, %c1_20], %2 {strides = array<i32>} : memref<1x18x18xf32, #tpu.memory_space<vmem>>, vector<1x16x16xf32>,
    %c0_21 = arith.constant 0 : index
    %c0_22 = arith.constant 0 : index
    %c0_23 = arith.constant 0 : index
    %12 = vector.load %arg4[%c0_21, %c0_22, %c0_23] : memref<1x18x18xf32, #tpu.memory_space<vmem>>, vector<1x16x18xf32>
    %c0_24 = arith.constant 0 : index
    %c1_25 = arith.constant 1 : index
    %c0_26 = arith.constant 0 : index
    %13 = vector.load %arg4[%c0_24, %c1_25, %c0_26] : memref<1x18x18xf32, #tpu.memory_space<vmem>>, vector<1x16x18xf32>
    %14 = arith.addf %12, %13 : vector<1x16x18xf32>
    %c0_27 = arith.constant 0 : index
    %c2 = arith.constant 2 : index
    %c0_28 = arith.constant 0 : index
    %15 = vector.load %arg4[%c0_27, %c2, %c0_28] : memref<1x18x18xf32, #tpu.memory_space<vmem>>, vector<1x16x18xf32>
    %16 = arith.addf %14, %15 : vector<1x16x18xf32>
    %17 = vector.extract_strided_slice %16 {offsets = [0, 0, 0], sizes = [1, 16, 16], strides = [1, 1, 1]} : vector<1x16x18xf32> to vector<1x16x16xf32>
    %18 = vector.extract_strided_slice %16 {offsets = [0, 0, 2], sizes = [1, 16, 16], strides = [1, 1, 1]} : vector<1x16x18xf32> to vector<1x16x16xf32>
    %19 = arith.subf %17, %18 : vector<1x16x16xf32>
    %c0_29 = arith.constant 0 : index
    %c0_30 = arith.constant 0 : index
    %c0_31 = arith.constant 0 : index
    %20 = vector.load %arg4[%c0_29, %c0_30, %c0_31] : memref<1x18x18xf32, #tpu.memory_space<vmem>>, vector<1x18x16xf32>
    %c0_32 = arith.constant 0 : index
    %c0_33 = arith.constant 0 : index
    %c1_34 = arith.constant 1 : index
    %21 = vector.load %arg4[%c0_32, %c0_33, %c1_34] : memref<1x18x18xf32, #tpu.memory_space<vmem>>, vector<1x18x16xf32>
    %22 = arith.addf %20, %21 : vector<1x18x16xf32>
    %c0_35 = arith.constant 0 : index
    %c0_36 = arith.constant 0 : index
    %c2_37 = arith.constant 2 : index
    %23 = vector.load %arg4[%c0_35, %c0_36, %c2_37] : memref<1x18x18xf32, #tpu.memory_space<vmem>>, vector<1x18x16xf32>
    %24 = arith.addf %22, %23 : vector<1x18x16xf32>
    %25 = vector.extract_strided_slice %24 {offsets = [0, 0, 0], sizes = [1, 16, 16], strides = [1, 1, 1]} : vector<1x18x16xf32> to vector<1x16x16xf32>
    %26 = vector.extract_strided_slice %24 {offsets = [0, 2, 0], sizes = [1, 16, 16], strides = [1, 1, 1]} : vector<1x18x16xf32> to vector<1x16x16xf32>
    %27 = arith.subf %25, %26 : vector<1x16x16xf32>
    %28 = arith.mulf %19, %19 : vector<1x16x16xf32>
    %29 = arith.mulf %27, %27 : vector<1x16x16xf32>
    %30 = arith.addf %28, %29 : vector<1x16x16xf32>
    %31 = vector.shape_cast %30 : vector<1x16x16xf32> to vector<1x1x16x16xf32>
    %cst_38 = arith.constant dense<0.000000e+00> : vector<1xf32>
    %32 = vector.multi_reduction <add>, %31, %cst_38 [1, 2, 3] : vector<1x1x16x16xf32> to vector<1xf32>
    %33 = vector.shape_cast %32 : vector<1xf32> to vector<1x1x1x1xf32>
    %34 = vector.extract %33[0, 0, 0, 0] : f32 from vector<1x1x1x1xf32>
    %35 = vector.broadcast %34 : f32 to vector<1x8x128xf32>
    %c0_39 = arith.constant 0 : index
    %c0_40 = arith.constant 0 : index
    %c0_41 = arith.constant 0 : index
    %36 = vector.load %arg3[%c0_39, %c0_40, %c0_41] : memref<1x8x128xf32, #tpu.memory_space<vmem>>, vector<1x8x128xf32>
    tpu.vector_store %arg3[%c0_39, %c0_40, %c0_41], %35 {strides = array<i32>} : memref<1x8x128xf32, #tpu.memory_space<vmem>>, vector<1x8x128xf32>,
    return
  }
  func.func @transform_0(%arg0: i32) -> (i32, i32, i32) {
    %c0_i32 = arith.constant 0 : i32
    %c0_i32_0 = arith.constant 0 : i32
    %c0_i32_1 = arith.constant 0 : i32
    return %arg0, %c0_i32, %c0_i32_0 : i32, i32, i32
  }
  func.func @transform_1(%arg0: i32) -> (i32, i32, i32) {
    %c0_i32 = arith.constant 0 : i32
    %c0_i32_0 = arith.constant 0 : i32
    %c0_i32_1 = arith.constant 0 : i32
    return %arg0, %c0_i32, %c0_i32_0 : i32, i32, i32
  }
  func.func @transform_2(%arg0: i32) -> (i32, i32, i32) {
    %c0_i32 = arith.constant 0 : i32
    %c0_i32_0 = arith.constant 0 : i32
    %c0_i32_1 = arith.constant 0 : i32
    return %arg0, %c0_i32, %c0_i32_0 : i32, i32, i32
  }
}

</mosaic_0001>

<bundles_post_ra>
// kernel: tpu_custom_call.1
= control target key start
LH: loop header
LB: loop body
LE: loop exit
PB: predicated region body
PF: predicated region fallthrough
CT: control target
= control target key end

     0   :  { %7 = vsyncpa [#allocation4], 0  ;;  %s827_s0 = inlined_call_operand.hbm [shape: f32[2,16,16], index: 0, kind: input, shape index: {}]   ;;  %s828_s1 = inlined_call_operand.hbm [shape: f32[2,16,16], index: 1, kind: input, shape index: {}]   ;;  %s829_s2 = inlined_call_operand.hbm [shape: f32[2,8,128], index: 2, kind: output, shape index: {}]  }
   0x1   :  { %9 = vsyncpa [#allocation4 + $0x1], 0 }
   0x2   :  { %10 = vsyncpa [#allocation7], 0 }
   0x3   :  { %12 = vsyncpa [#allocation7 + $0x1], 0 }
   0x4   :  { %13 = vsyncpa [#allocation5], 0 }
   0x5   :  { %15 = vsyncpa [#allocation5 + $0x1], 0  ;;  %s658_s9 = smov 0   ;;  %s660_s10 = smov 0  }
   0x6   :  { %s662_s11 = smov 0   ;;  %s664_s12 = smov 0  }
   0x7 LB: > { %s679_s13 = sadd.s32 4294967295, %s635_s12   ;;  %s427_s14 = sadd.s32 4294967294, %s635_s12   ;;  %s635_s12 = sphi %s664_s12, %s840_s12   ;;  %s631_s11 = sphi %s662_s11, %s839_s11   ;;  %s627_s10 = sphi %s660_s10, %s838_s10   ;;  %s623_s9 = sphi %s658_s9, %s837_s9  }
   0x8   : > { %s683_s15 = sadd.s32 1, %s635_s12   ;;  %s28_s16 = sadd.s32 1, %s631_s11 }
   0x9   : > { %s25_s17 = ssub.s32 %s635_s12, %s683_s15  ;;  %p35_p0 = scmp.ne.s32.totalorder %s631_s11, %s627_s10 }
   0xa   : > { %p26_p1 = scmp.eq.s32.totalorder %s25_s17, 0  ;;  %p36_p2 = scmp.eq.s32.totalorder %s635_s12, 0 }
   0xb   : > { %p41_p3 = scmp.ne.s32.totalorder %s627_s10, %s623_s9  ;;  %p42_p4 = scmp.eq.s32.totalorder %s679_s13, 0 }
   0xc   : > { %s695_s18 = scalar_select %p26_p1, %s631_s11, %s28_s16  }
   0xd   : > { %p697_p5 = por %p36_p2, %p35_p0  ;;  %p701_p6 = por %p42_p4, %p41_p3 }
   0xe   : > { %p91_p7 = scmp.eq.s32.totalorder %s679_s13, 1  ;;  %p97_p8 = scmp.eq.s32.totalorder %s427_s14, 1 }
   0xf   : > { %p465_p10 = scmp.lt.s32.totalorder %s635_s12, 2  ;;  %s717_s23 = sand.u32 1, %s631_s11  }
  0x10   : > { %p708_p11 = por %p91_p7, %p35_p0  ;;  %p712_p12 = por %p97_p8, %p41_p3 }
  0x11   : > { %s444_s24 = sshll.u32 %s635_s12, 4  ;;  %s430_s25 = sshll.u32 %s717_s23, 4 }
  0x12   : > { %s126_s28 = scalar_lea.hbm %s827_s0, %s444_s24  ;;  %s121_s30 = scalar_lea.vmem [#allocation3], %s430_s25 }
  0x13   : > { %s127_s29 = sshll.u32 %s126_s28, 4  ;;  %s129_s3 = sshll.u32 %s121_s30, 4  ;;  %s128_s29 = int_to_ptr.hbm [resolvable:$true] %s127_s29  ;;  %s130_s3 = int_to_ptr.vmem [resolvable:$true] %s129_s3 }
  0x14   : > { %p730_p13 = pnand %p465_p10, %p697_p5  ;;  %p436_p0 = scmp.ge.s32.totalorder %s635_s12, 1 }
  0x15   : > { %p159_p1 = scmp.lt.s32.totalorder %s635_s12, 3  ;;  %s118_s5 = scalar_lea.sflag [#allocation4], %s717_s23 }
  0x16   : > { %s505_s6 = sshra.s32 %s128_s29, 4  ;;  %p509_p3 = pneg %p730_p13  ;;  %s506_s6 = int_to_ptr.hbm [resolvable:$true] %s505_s6 }
  0x17   : > { %s507_s7 = scalar_lea.hbm %s506_s6, 16  ;;  %s512_s16 = scalar_lea.hbm %s827_s0, 32 }
  0x18   : > { %p508_p2 = scmp.ne.s32.totalorder %s506_s6, %s507_s7  ;;  %p513_p5 = scmp.lt.s32.totalorder %s506_s6, %s827_s0 }
  0x19   : > { %p514_p8 = scmp.lt.s32.totalorder %s512_s16, %s507_s7 }
  0x1a   : > { %p510_p4 = pnand %p509_p3, %p508_p2 }
  0x1b   : > { %p515_p10 = por %p514_p8, %p513_p5 }
  0x1c   : > { %p511_p7 = pneg %p510_p4 }
  0x1e   : > { %p516_p9 = pnand %p515_p10, %p511_p7 }
  0x20   : > { %519 = shalt.err (!%p516_p9)
}
  0x21   : > { %s637_s26 = smov 128   ;;  %s638_s27 = smov 8  }
  0x22   : > { %457 = dma.hbm_to_vmem [thread:$0]  (!%p730_p13), %s128_s29, 256, %s130_s3, %s118_s5, %s637_s26, %s637_s26, %s638_s27  }
  0x23   : > { %p754_p2 = pnand %p436_p0, %p159_p1  ;;  %s148_s7 = scalar_lea.hbm %s828_s1, %s444_s24 }
  0x24   : > { %s149_s8 = sshll.u32 %s148_s7, 4  ;;  %s143_s14 = scalar_lea.vmem [#allocation6], %s430_s25  ;;  %s150_s8 = int_to_ptr.hbm [resolvable:$true] %s149_s8 }
  0x25   : > { %s151_s16 = sshll.u32 %s143_s14, 4  ;;  %s140_s17 = scalar_lea.sflag [#allocation7], %s717_s23  ;;  %s152_s16 = int_to_ptr.vmem [resolvable:$true] %s151_s16 }
  0x26   : > { %s535_s19 = sshra.s32 %s150_s8, 4  ;;  %s542_s30 = scalar_lea.hbm %s828_s1, 32  ;;  %s536_s19 = int_to_ptr.hbm [resolvable:$true] %s535_s19 }
  0x27   : > { %s537_s29 = scalar_lea.hbm %s536_s19, 16  ;;  %p543_p4 = scmp.lt.s32.totalorder %s536_s19, %s828_s1 }
  0x28   : > { %p538_p9 = scmp.ne.s32.totalorder %s536_s19, %s537_s29  ;;  %p544_p7 = scmp.lt.s32.totalorder %s542_s30, %s537_s29 }
  0x2a   : > { %p540_p0 = pnand %p538_p9, %p509_p3  ;;  %p545_p5 = por %p544_p7, %p543_p4 }
  0x2c   : > { %p541_p1 = pneg %p540_p0 }
  0x2e   : > { %p546_p8 = pnand %p545_p5, %p541_p1 }
  0x30   : > { %549 = shalt.err (!%p546_p8)
}
  0x31   : > { %460 = dma.hbm_to_vmem [thread:$0]  (!%p730_p13), %s150_s8, 256, %s152_s16, %s140_s17, %s637_s26, %s637_s26, %s638_s27  }
  0x32   : > { %163 = sbr.rel (%p754_p2) target bundleno = 513 (0x201), region = 28  ;;  %s780_s23 = sand.u32 (!%p754_p2), 1, %s627_s10  }
  0x33   : > { %s437_s25 = sshll.u32 (!%p754_p2), %s780_s23, 4  ;;  %s166_s7 = scalar_lea.sflag (!%p754_p2), [#allocation4], %s780_s23 }
  0x34   : > { %s169_s14 = scalar_lea.vmem (!%p754_p2), [#allocation3], %s437_s25 }
  0x37   : > { %610 = dma.done.wait (%p701_p6), %s166_s7, 256  }
  0x38   : > { %612 = vsyncadd (%p701_p6), %s166_s7, 4294967040  ;;  %s176_s4 = scalar_lea.sflag [#allocation7], %s780_s23  ;;  %s179_s26 = scalar_lea.vmem [#allocation6], %s437_s25 }
  0x39   : > { %614 = dma.done.wait (%p701_p6), %s176_s4, 256  }
  0x3a   : > { %616 = vsyncadd (%p701_p6), %s176_s4, 4294967040  ;;  %vm212_vm0 = vcmask 139264   ;;  %vm215_vm1 = vcmask 7168   ;;  %v639_v0 = vmov 0.0   ;;  %vm220_vm2 = vcmask 146568   ;;  %v206_v1 = vld [vmem:[%s169_s14] sm:$0xff] }
  0x3b   : > { %213 = vst.msk [vmem:[#allocation2] sm:$0x1] %vm212_vm0, %v639_v0  ;;  %v208_v2 = vld [vmem:[%s179_s26] sm:$0xff]  ;;  %s640_s27 = smov 1   ;;  %v207_v4 = vld [vmem:[%s169_s14 + $0x8] sm:$0xff]  ;;  %vm218_vm3 = vcmask 1024  }
  0x3c   : > { %216 = vst.msk [vmem:[#allocation2] sm:$0xff] %vm215_vm1, %v639_v0  ;;  %v210_v3 = vsub.f32 %v206_v1, %v208_v2  ;;  %v209_v5 = vld [vmem:[%s179_s26 + $0x8] sm:$0xff]  ;;  %vm223_vm4 = vcmask 140424   ;;  %vm233_vm5 = vcmask 138248   ;;  %s641_s20 = smov 127   ;;  %s642_s28 = smov 126  }
  0x3d   : > { %217 = vst.msk [vmem:[#allocation2 + $0x8] sm:$0xff] %vm215_vm1, %v639_v0  ;;  %v211_v6 = vsub.f32 %v207_v4, %v209_v5  ;;  %vm287_vm6 = vcmask 1045504   ;;  %vm303_vm7 = vcmask 130048   ;;  %s439_s8 = sshll.u32 %s780_s23, 3  ;;  %s441_s16 = sshll.u32 %s679_s13, 3 }
  0x3e   : > { %221 = vst.msk [vmem:[#allocation2] sm:$0xff] %vm220_vm2, %v639_v0  ;;  %227 = vrot.lane.b32.xlu0 %v210_v3, %s640_s27  ;;  %s329_s29 = scalar_lea.hbm %s829_s2, %s441_s16  ;;  %s205_s3 = scalar_lea.vmem [#allocation8], %s439_s8 }
  0x3f   : > { %222 = vst.msk [vmem:[#allocation2 + $0x8] sm:$0xff] %vm220_vm2, %v639_v0  ;;  %s331_s5 = sshll.u32 %s205_s3, 4  ;;  %s333_s30 = sshll.u32 %s329_s29, 4  ;;  %s332_s5 = int_to_ptr.vmem [resolvable:$true] %s331_s5  ;;  %s334_s30 = int_to_ptr.hbm [resolvable:$true] %s333_s30 }
  0x40   : > { %214 = vst.msk [vmem:[#allocation2 + $0x11] sm:$0x1] %vm212_vm0, %v639_v0  ;;  %s319_s6 = scalar_lea.sflag [#allocation5], %s780_s23  ;;  %s579_s25 = sshra.s32 %s334_s30, 4  ;;  %s580_s25 = int_to_ptr.hbm [resolvable:$true] %s579_s25 }
  0x41   : > { %219 = vst.msk [vmem:[#allocation2 + $0x10] sm:$0x3] %vm218_vm3, %v639_v0  ;;  %s581_s7 = scalar_lea.hbm %s580_s25, 8  ;;  %s585_s4 = scalar_lea.hbm %s829_s2, 16 }
  0x42   : > { %224 = vst.msk [vmem:[#allocation2 + $0x10] sm:$0x3] %vm223_vm4, %v639_v0  ;;  %p582_p6 = scmp.ne.s32.totalorder %s580_s25, %s581_s7  ;;  %p586_p10 = scmp.lt.s32.totalorder %s580_s25, %s829_s2 }
  0x43   : > { %p587_p2 = scmp.lt.s32.totalorder %s585_s4, %s581_s7 }
  0x44   : > { %p583_p13 = pnand %p582_p6, %p708_p11 }
  0x45   : > { %p588_p9 = por %p587_p2, %p586_p10 }
  0x46   : > { %229 = vrot.lane.b32.xlu0 %v211_v6, %s640_s27  ;;  %p584_p3 = pneg %p583_p13 }
  0x48   : > { %p589_p0 = pnand %p588_p9, %p584_p3 }
  0xb0   : > { %v228_v7 = vpop.permute.xlu0 %227 }
  0xb1   : > { %234 = vst.msk [vmem:[#allocation2 + $0x1] sm:$0xff] %vm233_vm5, %v228_v7 }
  0xb8   : > { %v230_v8 = vpop.permute.xlu0 %229  ;;  %v236_v9 = vld [vmem:[#allocation2] sm:$0xff] }
  0xb9   : > { %235 = vst.msk [vmem:[#allocation2 + $0x9] sm:$0xff] %vm233_vm5, %v230_v8  ;;  %260 = vrot.lane.b32.xlu1 %v236_v9, %s641_s20  ;;  %v238_v16 = vld [vmem:[#allocation2 + $0x1] sm:$0xff] }
  0xba   : > { %v240_v18 = vadd.f32 %v238_v16, %v236_v9 }
  0xc0   : > { %v256_v10 = vld [vmem:[#allocation2 + $0x10] sm:$0x3]  ;;  %v237_v11 = vld [vmem:[#allocation2 + $0x8] sm:$0xff] }
  0xc1   : > { %v239_v12 = vld [vmem:[#allocation2 + $0x9] sm:$0xff]  ;;  %264 = vrot.lane.b32.xlu2 %v256_v10, %s641_s20  ;;  %274 = vrot.lane.b32.xlu0 %v237_v11, %s642_s28 }
  0xc2   : > { %262 = vrot.lane.b32.xlu1 %v237_v11, %s641_s20  ;;  %v241_v13 = vadd.f32 %v239_v12, %v237_v11  ;;  %v243_v14 = vld [vmem:[#allocation2 + $0xa] sm:$0xff]  ;;  %v242_v17 = vld [vmem:[#allocation2 + $0x2] sm:$0xff] }
  0xc3   : > { %v244_v19 = vadd.f32 %v242_v17, %v240_v18 }
  0xc4   : > { %v245_v15 = vadd.f32 %v243_v14, %v241_v13 }
  0xc9   : > { %272 = vrot.lane.b32.xlu2 %v236_v9, %s642_s28  ;;  %250 = vrot.lane.b32.xlu0 %v245_v15, %s642_s28 }
  0xca   : > { %276 = vrot.lane.b32.xlu1 %v256_v10, %s642_s28 }
  0xd1   : > { %248 = vrot.lane.b32.xlu2 %v244_v19, %s642_s28 }
 0x11b   : > { %v265_v20 = vpop.permute.xlu2 %264 }
 0x11c   : > { %v271_v31 = vadd.f32 %v265_v20, %v256_v10 }
 0x123   : > { %v273_v22 = vpop.permute.xlu2 %272 }
 0x12b   : > { %v261_v21 = vpop.permute.xlu1 %260  ;;  %v249_v32 = vpop.permute.xlu2 %248 }
 0x12c   : > { %v269_v23 = vadd.f32 %v261_v21, %v236_v9  ;;  %v254_v38 = vsub.f32 %v244_v19, %v249_v32 }
 0x12e   : > { %v281_v26 = vadd.f32 %v273_v22, %v269_v23  ;;  %v297_v43 = vmul.f32 %v254_v38, %v254_v38 }
 0x130   : > { %v288_v29 = vrot.slane %v281_v26, 2 }
 0x133   : > { %v275_v24 = vpop.permute.xlu0 %274 }
 0x134   : > { %v263_v25 = vpop.permute.xlu1 %262 }
 0x135   : > { %v270_v27 = vadd.f32 %v263_v25, %v237_v11 }
 0x137   : > { %v282_v28 = vadd.f32 %v275_v24, %v270_v27 }
 0x139   : > { %v289_v30 = vrot.slane %v282_v28, 2 }
 0x13b   : > { %v290_v33 = vsel %vm287_vm6, %v288_v29, %v289_v30  ;;  %v251_v37 = vpop.permute.xlu0 %250 }
 0x13c   : > { %v277_v34 = vpop.permute.xlu1 %276  ;;  %v295_v35 = vsub.f32 %v281_v26, %v290_v33  ;;  %v255_v40 = vsub.f32 %v245_v15, %v251_v37 }
 0x13d   : > { %v283_v36 = vadd.f32 %v277_v34, %v271_v31 }
 0x13e   : > { %v299_v41 = vmul.f32 %v295_v35, %v295_v35  ;;  %v298_v46 = vmul.f32 %v255_v40, %v255_v40 }
 0x13f   : > { %v291_v39 = vrot.slane %v283_v36, 2 }
 0x140   : > { %v301_v47 = vadd.f32 %v299_v41, %v297_v43 }
 0x141   : > { %v292_v42 = vsel %vm287_vm6, %v289_v30, %v291_v39 }
 0x142   : > { %v296_v44 = vsub.f32 %v282_v28, %v292_v42  ;;  %v304_v49 = vsel %vm303_vm7, %v301_v47, 0.0 }
 0x144   : > { %v300_v45 = vmul.f32 %v296_v44, %v296_v44 }
 0x146   : > { %v302_v48 = vadd.f32 %v300_v45, %v298_v46 }
 0x148   : > { %v305_v50 = vsel %vm303_vm7, %v302_v48, 0.0 }
 0x149   : > { %v306_v51 = vadd.f32 %v305_v50, %v304_v49 }
 0x14b   : > { %307 = vadd.xlane.f32.xlu1 %v306_v51 }
 0x1be   : > { %v308_v52 = vpop.xlane.xlu1 %307 }
 0x1bf   : > { %v309_v53 = vrot.slane %v308_v52, 4 }
 0x1c1   : > { %v310_v54 = vadd.f32 %v309_v53, %v308_v52 }
 0x1c3   : > { %v311_v55 = vrot.slane %v310_v54, 2 }
 0x1c5   : > { %v312_v56 = vadd.f32 %v311_v55, %v310_v54 }
 0x1c7   : > { %v313_v57 = vrot.slane %v312_v56, 1 }
 0x1c9   : > { %v314_v58 = vadd.f32 %v313_v57, %v312_v56 }
 0x1cb   : > { %446 = vpush %v314_v58 }
 0x1fc   : > { %s447_s24 = spop %446 }
 0x1fd   : > { %v316_v59 = vstv %s447_s24 }
 0x1fe   : > { %317 = vst [vmem:[%s205_s3] sm:$0xff] %v316_v59 }
 0x1ff   : > { %592 = shalt.err (!%p589_p0)
}
 0x200   : > { %452 = dma.vmem_to_hbm [thread:$0]  (%p708_p11), %s332_s5, 128, %s334_s30, %s319_s6  }
 0x201 PF: > { %s345_s23 = sand.u32 1, %s623_s9   ;;  %p836_p1 = scmp.ge.s32.totalorder %s635_s12, 2 }
 0x202   : > { %s346_s20 = scalar_lea.sflag [#allocation5], %s345_s23 }
 0x203   : > { %p462_p4 = pnand %p836_p1, %p712_p12 }
 0x205   : > { %p463_p7 = pneg %p462_p4 }
 0x207   : > { %618 = dma.done.wait (%p463_p7), %s346_s20, 128  }
 0x208   : > { %620 = vsyncadd (%p463_p7), %s346_s20, 4294967168  ;;  %p18_p5 = scmp.ge.s32.totalorder %s683_s15, 4   ;;  %s837_s9 = smov %s627_s10 }
 0x209   : > { %s838_s10 = smov %s631_s11  ;;  %s839_s11 = smov %s695_s18 }
 0x20a   : > { %s840_s12 = smov %s683_s15  ;;  %20 = sbr.rel (!%p18_p5) target bundleno = 7 (0x7), region = 86 }
 0x20f   :  { %352 = vsyncpa [#allocation4], 1 }
 0x210   :  { %354 = vsyncpa [#allocation4 + $0x1], 1 }
 0x211   :  { %355 = vsyncpa [#allocation7], 1 }
 0x212   :  { %357 = vsyncpa [#allocation7 + $0x1], 1 }
 0x213   :  { %358 = vsyncpa [#allocation5], 1 }
 0x214   :  { %360 = vsyncpa [#allocation5 + $0x1], 1 }

</bundles_post_ra>
